<compile_context>
chip_gen: v5e
topology: v5e:2x2
jax: 0.10.0
libtpu: 0.0.40
codegen_flags: <defaults>
</compile_context>

<pallas_src>
import jax
import jax.numpy as jnp
from jax.experimental import pallas as pl
from jax.experimental.pallas import tpu as pltpu

# ----- logical model sizes (small, synthetic) -----
B = 2           # batch
C_IN = 3        # point coordinates
N_PTS = 16      # points per cloud
H1, H2 = 64, 128
LATENT = 32
H3 = 128
OUT_DIM = C_IN * N_PTS          # 48
ROWS = B * N_PTS                # 32

# ----- padded / packed layout (lane-dense, sublane-aligned) -----
K1 = 8                          # layer-1 contraction dim, padded 3 -> 8
LANE = 128
# packed weight slab row offsets (all multiples of 8 -> sublane aligned slices)
R_W1, N_W1 = 0, K1              # w1: (8,  128)  cols 0:H1 real, rest 0
R_W2, N_W2 = R_W1 + N_W1, LANE  # w2: (128,128)  rows 0:H1 real, rest 0
R_W3, N_W3 = R_W2 + N_W2, LANE  # w3: (128,128)  cols 0:LATENT real, rest 0
R_W4, N_W4 = R_W3 + N_W3, LANE  # w4: (128,128)  rows 0:LATENT real, rest 0
R_W5, N_W5 = R_W4 + N_W4, LANE  # w5: (128,128)  cols 0:OUT_DIM real, rest 0
W_ROWS = R_W5 + N_W5            # 520
B_ROWS = 8                      # bias slab rows 0..4 = b1..b5 (zero-padded lanes)


# ---------------- fused forward kernel (encoder + max-pool + decoder) ----------------
def fused_forward_kernel(xr_ref, w_ref, b_ref, o_ref):
    # xr_ref: (ROWS, K1)     f32  point rows, channels zero-padded 3 -> 8
    # w_ref : (W_ROWS, 128)  bf16 packed, zero-padded weight slab
    # b_ref : (8, 128)       f32  packed, zero-padded bias slab
    # o_ref : (B, 128)       f32  lane-dense output (cols 0:OUT_DIM real)
    x = xr_ref[...].astype(jnp.bfloat16)

    # encoder layer 1 (single MXU matmul, K=8; padded rows/cols are zero -> exact)
    h = jnp.dot(x, w_ref[R_W1:R_W1 + N_W1, :], preferred_element_type=jnp.float32)
    h = jnp.maximum(h + b_ref[0:1, :], 0.0)                       # (ROWS, 128)

    # encoder layer 2
    h = jnp.dot(h.astype(jnp.bfloat16), w_ref[R_W2:R_W2 + N_W2, :],
                preferred_element_type=jnp.float32)
    h = jnp.maximum(h + b_ref[1:2, :], 0.0)                       # (ROWS, 128)

    # encoder layer 3 -> latent (padded latent cols are exactly 0)
    h = jnp.dot(h.astype(jnp.bfloat16), w_ref[R_W3:R_W3 + N_W3, :],
                preferred_element_type=jnp.float32)
    h = h + b_ref[2:3, :]                                         # (ROWS, 128)

    # global max-pool over points, per batch element
    # (N_PTS=16 is a multiple of 8 -> layout-preserving sublane split + XLU reduce)
    z = jnp.max(h.reshape(B, N_PTS, LANE), axis=1)                # (B, 128)

    # decoder layer 1 (zero-padded w4 rows x zero latent pad cols -> exact)
    g = jnp.dot(z.astype(jnp.bfloat16), w_ref[R_W4:R_W4 + N_W4, :],
                preferred_element_type=jnp.float32)
    g = jnp.maximum(g + b_ref[3:4, :], 0.0)                       # (B, 128)

    # decoder layer 2 -> lane-dense output store
    o_ref[...] = (jnp.dot(g.astype(jnp.bfloat16), w_ref[R_W5:R_W5 + N_W5, :],
                          preferred_element_type=jnp.float32)
                  + b_ref[4:5, :])                                # (B, 128)


# ---------------- wrapper ----------------
_FLOPS = (2 * ROWS * K1 * LANE          # layer 1
          + 2 * ROWS * LANE * LANE      # layer 2
          + 2 * ROWS * LANE * LANE      # layer 3
          + 2 * B * LANE * LANE         # layer 4
          + 2 * B * LANE * LANE)        # layer 5
_BYTES = ROWS * K1 * 4 + W_ROWS * LANE * 2 + B_ROWS * LANE * 4 + B * LANE * 4


def base_arch_forward(x_ncw, w_slab, b_slab):
    """forward(x) = decoder(encoder(x)); x in PyTorch NCW layout (B, 3, N)."""
    # NCW -> (B*N, C) rows, zero-padded to K1 channels (tiny fused XLA ops under jit).
    xr = jnp.transpose(x_ncw, (0, 2, 1)).reshape(ROWS, C_IN)
    xr = jnp.pad(xr, ((0, 0), (0, K1 - C_IN)))
    out = pl.pallas_call(
        fused_forward_kernel,
        out_shape=jax.ShapeDtypeStruct((B, LANE), jnp.float32),
        in_specs=[pl.BlockSpec(memory_space=pltpu.MemorySpace.VMEM)] * 3,
        out_specs=pl.BlockSpec(memory_space=pltpu.MemorySpace.VMEM),
        cost_estimate=pl.CostEstimate(flops=_FLOPS, transcendentals=0,
                                      bytes_accessed=_BYTES),
    )(xr, w_slab, b_slab)
    # drop lane padding, back to NCW like PyTorch's .view(bs, 3, N)
    return out[:, :OUT_DIM].reshape(B, C_IN, N_PTS)


def pack_params(enc_params, dec_params):
    """Pack the 10 raw tensors into one bf16 weight slab + one f32 bias slab."""
    w1, b1, w2, b2, w3, b3 = enc_params
    w4, b4, w5, b5 = dec_params
    w_slab = jnp.zeros((W_ROWS, LANE), jnp.float32)
    w_slab = w_slab.at[R_W1:R_W1 + C_IN, :H1].set(w1)
    w_slab = w_slab.at[R_W2:R_W2 + H1, :H2].set(w2)
    w_slab = w_slab.at[R_W3:R_W3 + H2, :LATENT].set(w3)
    w_slab = w_slab.at[R_W4:R_W4 + LATENT, :H3].set(w4)
    w_slab = w_slab.at[R_W5:R_W5 + H3, :OUT_DIM].set(w5)
    b_slab = jnp.zeros((B_ROWS, LANE), jnp.float32)
    b_slab = b_slab.at[0, :H1].set(b1.reshape(-1))
    b_slab = b_slab.at[1, :H2].set(b2.reshape(-1))
    b_slab = b_slab.at[2, :LATENT].set(b3.reshape(-1))
    b_slab = b_slab.at[3, :H3].set(b4.reshape(-1))
    b_slab = b_slab.at[4, :OUT_DIM].set(b5.reshape(-1))
    return w_slab.astype(jnp.bfloat16), b_slab


# ---------------- pure-JAX references ----------------
def reference_forward(x_ncw, enc_params, dec_params, matmul_dtype=jnp.float32):
    w1, b1, w2, b2, w3, b3 = enc_params
    w4, b4, w5, b5 = dec_params

    def mm(a, w):
        return jnp.dot(a.astype(matmul_dtype), w.astype(matmul_dtype),
                       preferred_element_type=jnp.float32)

    x = jnp.transpose(x_ncw, (0, 2, 1))               # (B, N, C)
    h = jnp.maximum(mm(x, w1) + b1, 0.0)
    h = jnp.maximum(mm(h, w2) + b2, 0.0)
    h = mm(h, w3) + b3
    z = jnp.max(h, axis=1)                            # (B, LATENT)
    h = jnp.maximum(mm(z, w4) + b4, 0.0)
    out = mm(h, w5) + b5
    return out.reshape(B, C_IN, N_PTS)


def init_params(key):
    ks = jax.random.split(key, 10)

    def w(k, fan_in, shape):
        return (jax.random.normal(k, shape, jnp.float32) / jnp.sqrt(fan_in)).astype(jnp.float32)

    enc = (
        w(ks[0], C_IN, (C_IN, H1)), w(ks[1], H1, (1, H1)) * 0.1,
        w(ks[2], H1, (H1, H2)),     w(ks[3], H2, (1, H2)) * 0.1,
        w(ks[4], H2, (H2, LATENT)), w(ks[5], LATENT, (1, LATENT)) * 0.1,
    )
    dec = (
        w(ks[6], LATENT, (LATENT, H3)), w(ks[7], H3, (1, H3)) * 0.1,
        w(ks[8], H3, (H3, OUT_DIM)),    w(ks[9], OUT_DIM, (1, OUT_DIM)) * 0.1,
    )
    return enc, dec


if __name__ == "__main__":
    key = jax.random.PRNGKey(0)
    k_x, k_p = jax.random.split(key)
    x = jax.random.normal(k_x, (B, C_IN, N_PTS), jnp.float32)   # NCW input, like PyTorch
    enc_params, dec_params = init_params(k_p)
    w_slab, b_slab = pack_params(enc_params, dec_params)

    fwd = jax.jit(base_arch_forward)
    out = jax.block_until_ready(fwd(x, w_slab, b_slab))
    assert out.shape == (B, C_IN, N_PTS)

    # exact-semantics check: reference with identical bf16-operand / f32-accumulate matmuls
    ref_mixed = reference_forward(x, enc_params, dec_params, matmul_dtype=jnp.bfloat16)
    assert jnp.allclose(out, ref_mixed, atol=2e-3, rtol=2e-3), "mismatch vs bf16-matmul reference"
    # sanity check vs the full-f32 forward (slack only from deliberate bf16 weight storage)
    ref_f32 = reference_forward(x, enc_params, dec_params, matmul_dtype=jnp.float32)
    assert jnp.allclose(out, ref_f32, atol=1e-1, rtol=1e-1), "mismatch vs f32 reference"

    # TODO(synk): train_step / chamfer losses / Fisher-Riemannian metric / SVM / kNN /
    # interpolation utilities are host-side training & evaluation logic, not part of
    # forward(); not kernelized.
    print("KERNEL_OK")
</pallas_src>

<mosaic_0001>
module attributes {stable_mosaic.version = 11 : i64} {
  func.func @fused_forward_kernel(%arg0: memref<32x8xf32, #tpu.memory_space<vmem>>, %arg1: memref<520x128xbf16, #tpu.memory_space<vmem>>, %arg2: memref<8x128xf32, #tpu.memory_space<vmem>>, %arg3: memref<2x128xf32, #tpu.memory_space<vmem>>) attributes {dimension_semantics = [], scalar_prefetch = 0 : i64, scratch_operands = 0 : i64, tpu.core_type = #tpu.core_type<tc>} {
    %c0 = arith.constant 0 : index
    %c0_0 = arith.constant 0 : index
    %0 = vector.load %arg0[%c0, %c0_0] : memref<32x8xf32, #tpu.memory_space<vmem>>, vector<32x8xf32>
    %1 = arith.truncf %0 : vector<32x8xf32> to vector<32x8xbf16>
    %c0_1 = arith.constant 0 : index
    %c0_2 = arith.constant 0 : index
    %2 = vector.load %arg1[%c0_1, %c0_2] : memref<520x128xbf16, #tpu.memory_space<vmem>>, vector<8x128xbf16>
    %cst = arith.constant dense<0.000000e+00> : vector<32x128xf32>
    %3 = tpu.matmul %1, %2, %cst {dimension_numbers = #tpu.dot_dimension_numbers<[1], [0], [0], [1], [0, 0, 1, 1], [], []>} : vector<32x8xbf16>, vector<8x128xbf16>, vector<32x128xf32> -> vector<32x128xf32>
    %c0_3 = arith.constant 0 : index
    %c0_4 = arith.constant 0 : index
    %4 = vector.load %arg2[%c0_3, %c0_4] : memref<8x128xf32, #tpu.memory_space<vmem>>, vector<1x128xf32>
    %5 = vector.broadcast %4 : vector<1x128xf32> to vector<32x128xf32>
    %6 = arith.addf %3, %5 : vector<32x128xf32>
    %cst_5 = arith.constant 0.000000e+00 : f32
    %7 = vector.broadcast %cst_5 : f32 to vector<32x128xf32>
    %8 = arith.maximumf %6, %7 : vector<32x128xf32>
    %9 = arith.truncf %8 : vector<32x128xf32> to vector<32x128xbf16>
    %c8 = arith.constant 8 : index
    %c0_6 = arith.constant 0 : index
    %10 = vector.load %arg1[%c8, %c0_6] : memref<520x128xbf16, #tpu.memory_space<vmem>>, vector<128x128xbf16>
    %cst_7 = arith.constant dense<0.000000e+00> : vector<32x128xf32>
    %11 = tpu.matmul %9, %10, %cst_7 {dimension_numbers = #tpu.dot_dimension_numbers<[1], [0], [0], [1], [0, 0, 1, 1], [], []>} : vector<32x128xbf16>, vector<128x128xbf16>, vector<32x128xf32> -> vector<32x128xf32>
    %c1 = arith.constant 1 : index
    %c0_8 = arith.constant 0 : index
    %12 = vector.load %arg2[%c1, %c0_8] : memref<8x128xf32, #tpu.memory_space<vmem>>, vector<1x128xf32>
    %13 = vector.broadcast %12 : vector<1x128xf32> to vector<32x128xf32>
    %14 = arith.addf %11, %13 : vector<32x128xf32>
    %cst_9 = arith.constant 0.000000e+00 : f32
    %15 = vector.broadcast %cst_9 : f32 to vector<32x128xf32>
    %16 = arith.maximumf %14, %15 : vector<32x128xf32>
    %17 = arith.truncf %16 : vector<32x128xf32> to vector<32x128xbf16>
    %c136 = arith.constant 136 : index
    %c0_10 = arith.constant 0 : index
    %18 = vector.load %arg1[%c136, %c0_10] : memref<520x128xbf16, #tpu.memory_space<vmem>>, vector<128x128xbf16>
    %cst_11 = arith.constant dense<0.000000e+00> : vector<32x128xf32>
    %19 = tpu.matmul %17, %18, %cst_11 {dimension_numbers = #tpu.dot_dimension_numbers<[1], [0], [0], [1], [0, 0, 1, 1], [], []>} : vector<32x128xbf16>, vector<128x128xbf16>, vector<32x128xf32> -> vector<32x128xf32>
    %c2 = arith.constant 2 : index
    %c0_12 = arith.constant 0 : index
    %20 = vector.load %arg2[%c2, %c0_12] : memref<8x128xf32, #tpu.memory_space<vmem>>, vector<1x128xf32>
    %21 = vector.broadcast %20 : vector<1x128xf32> to vector<32x128xf32>
    %22 = arith.addf %19, %21 : vector<32x128xf32>
    %23 = vector.shape_cast %22 : vector<32x128xf32> to vector<2x16x128xf32>
    %cst_13 = arith.constant dense<0xFF800000> : vector<2x128xf32>
    %24 = vector.multi_reduction <maximumf>, %23, %cst_13 [1] : vector<2x16x128xf32> to vector<2x128xf32>
    %25 = arith.truncf %24 : vector<2x128xf32> to vector<2x128xbf16>
    %c264 = arith.constant 264 : index
    %c0_14 = arith.constant 0 : index
    %26 = vector.load %arg1[%c264, %c0_14] : memref<520x128xbf16, #tpu.memory_space<vmem>>, vector<128x128xbf16>
    %cst_15 = arith.constant dense<0.000000e+00> : vector<2x128xf32>
    %27 = tpu.matmul %25, %26, %cst_15 {dimension_numbers = #tpu.dot_dimension_numbers<[1], [0], [0], [1], [0, 0, 1, 1], [], []>} : vector<2x128xbf16>, vector<128x128xbf16>, vector<2x128xf32> -> vector<2x128xf32>
    %c3 = arith.constant 3 : index
    %c0_16 = arith.constant 0 : index
    %28 = vector.load %arg2[%c3, %c0_16] : memref<8x128xf32, #tpu.memory_space<vmem>>, vector<1x128xf32>
    %29 = vector.broadcast %28 : vector<1x128xf32> to vector<2x128xf32>
    %30 = arith.addf %27, %29 : vector<2x128xf32>
    %cst_17 = arith.constant 0.000000e+00 : f32
    %31 = vector.broadcast %cst_17 : f32 to vector<2x128xf32>
    %32 = arith.maximumf %30, %31 : vector<2x128xf32>
    %33 = arith.truncf %32 : vector<2x128xf32> to vector<2x128xbf16>
    %c392 = arith.constant 392 : index
    %c0_18 = arith.constant 0 : index
    %34 = vector.load %arg1[%c392, %c0_18] : memref<520x128xbf16, #tpu.memory_space<vmem>>, vector<128x128xbf16>
    %cst_19 = arith.constant dense<0.000000e+00> : vector<2x128xf32>
    %35 = tpu.matmul %33, %34, %cst_19 {dimension_numbers = #tpu.dot_dimension_numbers<[1], [0], [0], [1], [0, 0, 1, 1], [], []>} : vector<2x128xbf16>, vector<128x128xbf16>, vector<2x128xf32> -> vector<2x128xf32>
    %c4 = arith.constant 4 : index
    %c0_20 = arith.constant 0 : index
    %36 = vector.load %arg2[%c4, %c0_20] : memref<8x128xf32, #tpu.memory_space<vmem>>, vector<1x128xf32>
    %37 = vector.broadcast %36 : vector<1x128xf32> to vector<2x128xf32>
    %38 = arith.addf %35, %37 : vector<2x128xf32>
    %c0_21 = arith.constant 0 : index
    %c0_22 = arith.constant 0 : index
    %39 = vector.load %arg3[%c0_21, %c0_22] : memref<2x128xf32, #tpu.memory_space<vmem>>, vector<2x128xf32>
    tpu.vector_store %arg3[%c0_21, %c0_22], %38 {strides = array<i32>} : memref<2x128xf32, #tpu.memory_space<vmem>>, vector<2x128xf32>,
    return
  }
}

</mosaic_0001>

<bundles_post_ra>
// kernel: base_arch_forward.1
= control target key start
LH: loop header
LB: loop body
LE: loop exit
PB: predicated region body
PF: predicated region fallthrough
CT: control target
= control target key end

     0   :  { %8 = vsyncpa [#allocation3], 0  ;;  %s638_s15 = smov [#allocation2]   ;;  %s639_s17 = smov 64   ;;  %s694_s0 = inlined_call_operand.vmem [shape: f32[32,8], index: 0, kind: input, shape index: {}]   ;;  %s695_s1 = inlined_call_operand.hbm [shape: bf16[520,128], index: 1, kind: input, shape index: {}]   ;;  %s696_s2 = inlined_call_operand.vmem [shape: f32[8,128], index: 2, kind: input, shape index: {}]   ;;  %s697_s3 = inlined_call_operand.vmem [shape: f32[2,128], index: 3, kind: output, shape index: {}]  }
   0x1   :  { %s15_s14 = sshll.u32 %s695_s1, 4  ;;  %s17_s16 = sshll.u32 %s638_s15, 4  ;;  %s16_s14 = int_to_ptr.hbm [resolvable:$true] %s15_s14  ;;  %s18_s16 = int_to_ptr.vmem [resolvable:$true] %s17_s16 }
   0x2   :  { %s640_s18 = smov 4  }
   0x3   :  { %23 = dma.hbm_to_vmem [thread:$0]  %s16_s14, 4160, %s18_s16, [#allocation3], %s639_s17, %s639_s17, %s640_s18  }
   0x4   :  { %636 = dma.done.wait [#allocation3], 4160  }
   0x5   :  { %637 = vsyncadd [#allocation3], 4294963136  ;;  %vm47_vm0 = vcmask 1043456   ;;  %v37_v0 = vld [vmem:[#allocation2] sm:$0xf]  ;;  %v32_v2 = vld [vmem:[%s694_s0 + $0x8] sm:$0xff] }
   0x6   :  { %v31_v1 = vld [vmem:[%s694_s0] sm:$0xff]  ;;  %v49_v3 = vsel %vm47_vm0, %v37_v0, 0  ;;  %vm40_vm1 = vcmask 64512   ;;  %v578_v6 = vld [vmem:[#allocation2 + $0x34] sm:$0xff]  ;;  %v577_v7 = vld [vmem:[#allocation2 + $0x2c] sm:$0xff]  ;;  %vm290_vm2 = vcmask 1041409  }
   0x7   :  { %v35_v4 = vpack.c.bf16 %v32_v2, %v31_v1  ;;  %v579_v5 = vld [vmem:[#allocation2 + $0x3c] sm:$0xff]  ;;  %58 = vmatpush.bf16.msra.mxu0 %v49_v3  ;;  %v576_v8 = vld [vmem:[#allocation2 + $0x24] sm:$0xff]  ;;  %v33_v9 = vld [vmem:[%s694_s0 + $0x10] sm:$0xff] }
   0x8   :  { %142 = vmatpush.bf16.msra.mxu1 %v579_v5  ;;  %v34_v10 = vld [vmem:[%s694_s0 + $0x18] sm:$0xff]  ;;  %v573_v14 = vld [vmem:[#allocation2 + $0xc] sm:$0xff]  ;;  %v572_v15 = vld [vmem:[#allocation2 + $0x4] sm:$0xff] }
   0x9   :  { %v36_v11 = vpack.c.bf16 %v34_v10, %v33_v9  ;;  %v575_v12 = vld [vmem:[#allocation2 + $0x1c] sm:$0xff]  ;;  %v574_v13 = vld [vmem:[#allocation2 + $0x14] sm:$0xff]  ;;  %v585_v20 = vld [vmem:[#allocation2 + $0x6c] sm:$0xff] }
   0xa   :  { %442 = vmatmul.msk.bf16.vlgmr.msra.gmra.mxu0 %vm40_vm1, %v35_v4  ;;  %v587_v16 = vld [vmem:[#allocation2 + $0x7c] sm:$0xff]  ;;  %v586_v18 = vld [vmem:[#allocation2 + $0x74] sm:$0xff]  ;;  %v584_v24 = vld [vmem:[#allocation2 + $0x64] sm:$0xff] }
   0xb   :  { %233 = vmatpush.bf16.msra.mxu2 %v587_v16  ;;  %v607_v19 = vld [vmem:[%s696_s2] ss:$0 sm:$0xff]  ;;  %v582_v36 = vld [vmem:[#allocation2 + $0x54] sm:$0xff]  ;;  %v581_v37 = vld [vmem:[#allocation2 + $0x4c] sm:$0xff] }
   0xc   :  { %143 = vmatpush.bf16.msra.mxu1 %v578_v6  ;;  %v583_v35 = vld [vmem:[#allocation2 + $0x5c] sm:$0xff]  ;;  %v580_v38 = vld [vmem:[#allocation2 + $0x44] sm:$0xff]  ;;  %v594_v55 = vld [vmem:[#allocation2 + $0xb4] sm:$0xff] }
   0xd   :  { %v608_v40 = vld [vmem:[%s696_s2 + $0x1] ss:$0 sm:$0xff]  ;;  %v593_v56 = vld [vmem:[#allocation2 + $0xac] sm:$0xff]  ;;  %v592_v57 = vld [vmem:[#allocation2 + $0xa4] sm:$0xff] }
   0xe   :  { %v595_v54 = vld [vmem:[#allocation2 + $0xbc] sm:$0xff]  ;;  %v590_v60 = vld [vmem:[#allocation2 + $0x94] sm:$0xff]  ;;  %v589_v62 = vld [vmem:[#allocation2 + $0x8c] sm:$0xff] }
   0xf   :  { %234 = vmatpush.bf16.msra.mxu2 %v586_v18  ;;  %342 = vmatpush.bf16.msra.mxu3 %v595_v54  ;;  %v591_v58 = vld [vmem:[#allocation2 + $0x9c] sm:$0xff]  ;;  %v588_v2 = vld [vmem:[#allocation2 + $0x84] sm:$0xff]  ;;  %v601_v9 = vld [vmem:[#allocation2 + $0xec] sm:$0xff] }
  0x10   :  { %144 = vmatpush.bf16.msra.mxu1 %v577_v7  ;;  %v609_v61 = vld [vmem:[%s696_s2 + $0x2] ss:$0 sm:$0xff]  ;;  %v602_v7 = vld [vmem:[#allocation2 + $0xf4] sm:$0xff] }
  0x11   :  { %v603_v6 = vld [vmem:[#allocation2 + $0xfc] sm:$0xff] }
  0x12   :  { %423 = vmatpush.bf16.msrb.mxu0 %v603_v6  ;;  %v599_v18 = vld [vmem:[#allocation2 + $0xdc] sm:$0xff] }
  0x13   :  { %235 = vmatpush.bf16.msra.mxu2 %v585_v20  ;;  %343 = vmatpush.bf16.msra.mxu3 %v594_v55 }
  0x14   :  { %145 = vmatpush.bf16.msra.mxu1 %v576_v8 }
  0x16   :  { %424 = vmatpush.bf16.msrb.mxu0 %v602_v7 }
  0x17   :  { %236 = vmatpush.bf16.msra.mxu2 %v584_v24  ;;  %344 = vmatpush.bf16.msra.mxu3 %v593_v56 }
  0x18   :  { %146 = vmatpush.bf16.msra.mxu1 %v575_v12 }
  0x1a   :  { %443 = vmatmul.msk.bf16.gmra.mxu0 %vm40_vm1, %v36_v11 }
  0x1b   :  { %237 = vmatpush.bf16.msra.mxu2 %v583_v35  ;;  %345 = vmatpush.bf16.msra.mxu3 %v592_v57  ;;  %v610_v35 = vld [vmem:[%s696_s2 + $0x3] ss:$0 sm:$0xff] }
  0x1c   :  { %147 = vmatpush.bf16.msra.mxu1 %v574_v13  ;;  %425 = vmatpush.bf16.msrb.mxu0 %v601_v9 }
  0x1f   :  { %238 = vmatpush.bf16.msra.mxu2 %v582_v36  ;;  %346 = vmatpush.bf16.msra.mxu3 %v591_v58 }
  0x20   :  { %148 = vmatpush.bf16.msra.mxu1 %v573_v14  ;;  %v600_v14 = vld [vmem:[#allocation2 + $0xe4] sm:$0xff] }
  0x21   :  { %426 = vmatpush.bf16.msrb.mxu0 %v600_v14 }
  0x23   :  { %239 = vmatpush.bf16.msra.mxu2 %v581_v37  ;;  %347 = vmatpush.bf16.msra.mxu3 %v590_v60 }
  0x24   :  { %149 = vmatpush.bf16.msra.mxu1 %v572_v15 }
  0x25   :  { %427 = vmatpush.bf16.msrb.mxu0 %v599_v18 }
  0x27   :  { %240 = vmatpush.bf16.msra.mxu2 %v580_v38  ;;  %348 = vmatpush.bf16.msra.mxu3 %v589_v62 }
  0x2b   :  { %349 = vmatpush.bf16.msra.mxu3 %v588_v2 }
  0x87   :  { %v60_v17 = vpop.f32.mrf.mxu0 }
  0x88   :  { %v61_v21 = vadd.f32 %v607_v19, %v60_v17 }
  0x8a   :  { %v70_v25 = vmax.f32 %v61_v21, 0.0 }
  0x8f   :  { %v62_v22 = vpop.f32.mrf.mxu0 }
  0x90   :  { %v63_v23 = vadd.f32 %v607_v19, %v62_v22  ;;  %v598_v22 = vld [vmem:[#allocation2 + $0xd4] sm:$0xff] }
  0x91   :  { %428 = vmatpush.bf16.msrb.mxu0 %v598_v22 }
  0x92   :  { %v71_v26 = vmax.f32 %v63_v23, 0.0 }
  0x94   :  { %v74_v27 = vpack.c.bf16 %v71_v26, %v70_v25  ;;  %v597_v26 = vld [vmem:[#allocation2 + $0xcc] sm:$0xff] }
  0x95   :  { %429 = vmatpush.bf16.msrb.mxu0 %v597_v26 }
  0x96   :  { %150 = vmatmul.bf16.vlgmr.msra.gmra.mxu1 %v74_v27 }
  0x97   :  { %v65_v28 = vpop.f32.mrf.mxu0 }
  0x98   :  { %v66_v29 = vadd.f32 %v607_v19, %v65_v28 }
  0x9a   :  { %v72_v32 = vmax.f32 %v66_v29, 0.0 }
  0x9f   :  { %v67_v30 = vpop.f32.mrf.mxu0 }
  0xa0   :  { %v68_v31 = vadd.f32 %v607_v19, %v67_v30 }
  0xa2   :  { %v73_v33 = vmax.f32 %v68_v31, 0.0 }
  0xa4   :  { %v75_v34 = vpack.c.bf16 %v73_v33, %v72_v32 }
  0xa6   :  { %155 = vmatmul.bf16.gmra.mxu1 %v75_v34  ;;  %v596_v34 = vld [vmem:[#allocation2 + $0xc4] sm:$0xff] }
  0xa7   :  { %430 = vmatpush.bf16.msrb.mxu0 %v596_v34 }
 0x113   :  { %v151_v39 = vpop.f32.mrf.mxu1 }
 0x114   :  { %v152_v41 = vadd.f32 %v608_v40, %v151_v39 }
 0x116   :  { %v161_v44 = vmax.f32 %v152_v41, 0.0  ;;  %v611_v41 = vld [vmem:[%s696_s2 + $0x4] ss:$0 sm:$0xff] }
 0x11b   :  { %v153_v42 = vpop.f32.mrf.mxu1 }
 0x11c   :  { %v154_v43 = vadd.f32 %v608_v40, %v153_v42 }
 0x11e   :  { %v162_v45 = vmax.f32 %v154_v43, 0.0 }
 0x120   :  { %v165_v46 = vpack.c.bf16 %v162_v45, %v161_v44 }
 0x122   :  { %241 = vmatmul.bf16.vlgmr.msra.gmra.mxu2 %v165_v46 }
 0x123   :  { %v156_v47 = vpop.f32.mrf.mxu1 }
 0x124   :  { %v157_v48 = vadd.f32 %v608_v40, %v156_v47 }
 0x126   :  { %v163_v51 = vmax.f32 %v157_v48, 0.0 }
 0x12b   :  { %v158_v49 = vpop.f32.mrf.mxu1 }
 0x12c   :  { %v159_v50 = vadd.f32 %v608_v40, %v158_v49 }
 0x12e   :  { %v164_v52 = vmax.f32 %v159_v50, 0.0 }
 0x130   :  { %v166_v53 = vpack.c.bf16 %v164_v52, %v163_v51 }
 0x132   :  { %246 = vmatmul.bf16.gmra.mxu2 %v166_v53 }
 0x1a5   :  { %v242_v59 = vpop.f32.mrf.mxu2 }
 0x1a6   :  { %v243_v0 = vadd.f32 %v609_v61, %v242_v59 }
 0x1ad   :  { %v244_v63 = vpop.f32.mrf.mxu2 }
 0x1ae   :  { %v245_v1 = vadd.f32 %v609_v61, %v244_v63 }
 0x1b0   :  { %v252_v3 = vmax.f32 %v243_v0, %v245_v1 }
 0x1b2   :  { %v253_v4 = vrot.slane %v252_v3, 4 }
 0x1b4   :  { %v254_v8 = vmax.f32 %v252_v3, %v253_v4 }
 0x1b5   :  { %v247_v5 = vpop.f32.mrf.mxu2 }
 0x1b6   :  { %v255_v10 = vrot.slane %v254_v8, 2  ;;  %v248_v12 = vadd.f32 %v609_v61, %v247_v5 }
 0x1b8   :  { %v256_v15 = vmax.f32 %v254_v8, %v255_v10 }
 0x1ba   :  { %v257_v19 = vrot.slane %v256_v15, 1 }
 0x1bc   :  { %v258_v24 = vmax.f32 %v256_v15, %v257_v19 }
 0x1bd   :  { %v249_v11 = vpop.f32.mrf.mxu2 }
 0x1be   :  { %v250_v13 = vadd.f32 %v609_v61, %v249_v11  ;;  %v266_v28 = vpack.c.bf16 %v258_v24, %v258_v24 }
 0x1c0   :  { %v259_v16 = vmax.f32 %v248_v12, %v250_v13  ;;  %v288_v30 = vunpack.c.l.b16 %v266_v28 }
 0x1c2   :  { %v260_v17 = vrot.slane %v259_v16, 4 }
 0x1c4   :  { %v261_v20 = vmax.f32 %v259_v16, %v260_v17 }
 0x1c6   :  { %v262_v21 = vrot.slane %v261_v20, 2 }
 0x1c8   :  { %v263_v23 = vmax.f32 %v261_v20, %v262_v21 }
 0x1ca   :  { %v264_v25 = vrot.slane %v263_v23, 1 }
 0x1cc   :  { %v265_v27 = vmax.f32 %v263_v23, %v264_v25 }
 0x1ce   :  { %v267_v29 = vpack.c.bf16 %v265_v27, %v265_v27 }
 0x1d0   :  { %v289_v31 = vunpack.c.l.b16 %v267_v29 }
 0x1d2   :  { %v291_v32 = vsel %vm290_vm2, %v289_v31, %v288_v30 }
 0x1d3   :  { %v292_v33 = vpack.c.b16 %v291_v32, %v291_v32 }
 0x1d5   :  { %350 = vmatmul.bf16.vlgmr.msra.gmra.mxu3 %v292_v33 }
 0x258   :  { %v351_v36 = vpop.f32.mrf.mxu3 }
 0x259   :  { %v352_v37 = vadd.f32 %v610_v35, %v351_v36 }
 0x25b   :  { %v355_v38 = vmax.f32 %v352_v37, 0.0 }
 0x25d   :  { %v356_v39 = vpack.c.bf16 %v355_v38, %v355_v38 }
 0x25f   :  { %431 = vmatmul.bf16.vlgmr.msrb.gmra.mxu0 %v356_v39 }
 0x260   :  { %v353_v40 = vpop.f32.mrf.mxu3 }
 0x2dc   :  { %v432_v42 = vpop.f32.mrf.mxu0 }
 0x2dd   :  { %v433_v43 = vadd.f32 %v611_v41, %v432_v42 }
 0x2df   :  { %436 = vst [vmem:[%s697_s3] sm:$0x3] %v433_v43 }
 0x2e4   :  { %v434_v44 = vpop.f32.mrf.mxu0 }
 0x2e5   :  { %441 = vsyncpa [#allocation3], 1 }

</bundles_post_ra>
